<compile_context>
chip_gen: v6e
topology: v6e:2x2x1
jax: 0.10.0
libtpu: 0.0.40
codegen_flags: <defaults>
</compile_context>

<pallas_src>
import functools

import jax
import jax.numpy as jnp
from jax.experimental import pallas as pl
from jax.experimental.pallas import tpu as pltpu


def _linear_kernel(x_ref, w_ref, b_ref, o_ref, *, apply_relu):
    """One N-tile of out = [relu](x @ W + b); K is fully resident."""
    x_bf16 = x_ref[...].astype(jnp.bfloat16)          # tiny (M rows); cast on VPU
    acc = jnp.dot(x_bf16, w_ref[...], preferred_element_type=jnp.float32)
    r = acc + b_ref[...]                               # bias broadcast over batch rows
    if apply_relu:
        r = jnp.maximum(r, 0.0)
    o_ref[...] = r.astype(o_ref.dtype)


def pallas_linear(x, w, b, *, apply_relu, tn=1024):
    """Compute [relu](x @ w + b) with a weight-streaming Pallas matmul.

    x: [M, K] float32
    w: [K, N] bfloat16 (transpose of PyTorch nn.Linear.weight)
    b: [N]    float32
    """
    M, K = x.shape
    K2, N = w.shape
    assert K == K2 and b.shape == (N,)

    w = w.astype(jnp.bfloat16)  # no-op if already bf16

    # Pad N up to a multiple of 128 so output stores are lane-dense (unmasked vst).
    n_pad = -N % 128
    if n_pad:
        w = jnp.pad(w, ((0, 0), (0, n_pad)))
        b = jnp.pad(b, ((0, n_pad),))
    Np = N + n_pad

    # Largest tile width <= tn that divides Np and is a multiple of 128.
    tn = min(tn, Np)
    while Np % tn != 0:
        tn -= 128

    grid = (Np // tn,)
    kernel = functools.partial(_linear_kernel, apply_relu=apply_relu)

    out = pl.pallas_call(
        kernel,
        out_shape=jax.ShapeDtypeStruct((M, Np), jnp.float32),
        grid_spec=pltpu.PrefetchScalarGridSpec(
            num_scalar_prefetch=0,
            grid=grid,
            in_specs=[
                pl.BlockSpec((M, K), lambda j: (0, 0)),    # x: fully resident
                pl.BlockSpec((K, tn), lambda j: (0, j)),   # bf16 weight tile (streamed)
                pl.BlockSpec((1, tn), lambda j: (0, j)),   # bias tile
            ],
            out_specs=pl.BlockSpec((M, tn), lambda j: (0, j)),
        ),
        compiler_params=pltpu.CompilerParams(
            dimension_semantics=("parallel",),             # v7x: shard N tiles over 2 TCs
            vmem_limit_bytes=32 * 1024 * 1024,             # above v5e's 16 MiB default
        ),
    )(x, w, b.reshape(1, Np))

    return out[:, :N] if n_pad else out


def fc_block_forward(x, params):
    """FcBlock forward (inference): dropout is identity."""
    w1, b1, w2, b2, w3, b3 = params
    h = pallas_linear(x, w1, b1, apply_relu=True)
    h = pallas_linear(h, w2, b2, apply_relu=True)
    out = pallas_linear(h, w3, b3, apply_relu=False)
    return out


def init_params(key, in_channels, hidden, num_classes):
    ks = jax.random.split(key, 6)
    scale = 0.02
    # Weights stored in bf16 (streamed dtype); biases stay f32.
    w1 = (scale * jax.random.normal(ks[0], (in_channels, hidden), jnp.float32)).astype(jnp.bfloat16)
    b1 = scale * jax.random.normal(ks[1], (hidden,), jnp.float32)
    w2 = (scale * jax.random.normal(ks[2], (hidden, hidden), jnp.float32)).astype(jnp.bfloat16)
    b2 = scale * jax.random.normal(ks[3], (hidden,), jnp.float32)
    w3 = (scale * jax.random.normal(ks[4], (hidden, num_classes), jnp.float32)).astype(jnp.bfloat16)
    b3 = scale * jax.random.normal(ks[5], (num_classes,), jnp.float32)
    return (w1, b1, w2, b2, w3, b3)


def reference_forward(x, params):
    """Pure-JAX reference using the same bf16 weights / f32 accumulation."""
    w1, b1, w2, b2, w3, b3 = params
    h = jnp.dot(x.astype(jnp.bfloat16), w1, preferred_element_type=jnp.float32) + b1
    h = jnp.maximum(h, 0.0)
    h = jnp.dot(h.astype(jnp.bfloat16), w2, preferred_element_type=jnp.float32) + b2
    h = jnp.maximum(h, 0.0)
    return jnp.dot(h.astype(jnp.bfloat16), w3, preferred_element_type=jnp.float32) + b3


if __name__ == "__main__":
    # Small but module-consistent shapes: FcBlock hardcodes hidden=4096,
    # num_classes defaults to 12; pick a small in_channels and batch.
    batch = 2
    in_channels = 256
    hidden = 4096
    num_classes = 12

    key = jax.random.PRNGKey(0)
    kx, kp = jax.random.split(key)
    x = jax.random.normal(kx, (batch, in_channels), jnp.float32)
    params = init_params(kp, in_channels, hidden, num_classes)

    out = fc_block_forward(x, params)
    out = jax.block_until_ready(out)

    ref = reference_forward(x, params)
    assert out.shape == (batch, num_classes)
    assert jnp.allclose(out, ref, atol=2e-2, rtol=2e-2), "mismatch vs reference"

    print("KERNEL_OK")
</pallas_src>

<mosaic_0001>
module attributes {stable_mosaic.version = 11 : i64} {
  func.func @_linear_kernel(%arg0: i32, %arg1: memref<2x256xf32, #tpu.memory_space<vmem>>, %arg2: memref<256x1024xbf16, #tpu.memory_space<vmem>>, %arg3: memref<1x1024xf32, #tpu.memory_space<vmem>>, %arg4: memref<2x1024xf32, #tpu.memory_space<vmem>>) attributes {dimension_semantics = [#tpu.dimension_semantics<parallel>], iteration_bounds = array<i64: 4>, scalar_prefetch = 0 : i64, scratch_operands = 0 : i64, tpu.core_type = #tpu.core_type<tc>, window_params = [{pipeline_mode = #tpu.pipeline_mode<synchronous>, transform_indices = @transform_0, window_bounds = array<i64: 2, 256>}, {transform_indices = @transform_1, window_bounds = array<i64: 256, 1024>}, {transform_indices = @transform_2, window_bounds = array<i64: 1, 1024>}, {transform_indices = @transform_3, window_bounds = array<i64: 2, 1024>}]} {
    %c0 = arith.constant 0 : index
    %c0_0 = arith.constant 0 : index
    %0 = vector.load %arg1[%c0, %c0_0] : memref<2x256xf32, #tpu.memory_space<vmem>>, vector<2x256xf32>
    %1 = arith.truncf %0 : vector<2x256xf32> to vector<2x256xbf16>
    %c0_1 = arith.constant 0 : index
    %c0_2 = arith.constant 0 : index
    %2 = vector.load %arg2[%c0_1, %c0_2] : memref<256x1024xbf16, #tpu.memory_space<vmem>>, vector<256x1024xbf16>
    %cst = arith.constant dense<0.000000e+00> : vector<2x1024xf32>
    %3 = tpu.matmul %1, %2, %cst {dimension_numbers = #tpu.dot_dimension_numbers<[1], [0], [0], [1], [0, 0, 1, 1], [], []>} : vector<2x256xbf16>, vector<256x1024xbf16>, vector<2x1024xf32> -> vector<2x1024xf32>
    %c0_3 = arith.constant 0 : index
    %c0_4 = arith.constant 0 : index
    %4 = vector.load %arg3[%c0_3, %c0_4] : memref<1x1024xf32, #tpu.memory_space<vmem>>, vector<1x1024xf32>
    %5 = vector.broadcast %4 : vector<1x1024xf32> to vector<2x1024xf32>
    %6 = arith.addf %3, %5 : vector<2x1024xf32>
    %cst_5 = arith.constant 0.000000e+00 : f32
    %7 = vector.broadcast %cst_5 : f32 to vector<2x1024xf32>
    %8 = arith.maximumf %6, %7 : vector<2x1024xf32>
    %c0_6 = arith.constant 0 : index
    %c0_7 = arith.constant 0 : index
    %9 = vector.load %arg4[%c0_6, %c0_7] : memref<2x1024xf32, #tpu.memory_space<vmem>>, vector<2x1024xf32>
    tpu.vector_store %arg4[%c0_6, %c0_7], %8 {strides = array<i32>} : memref<2x1024xf32, #tpu.memory_space<vmem>>, vector<2x1024xf32>,
    return
  }
  func.func @transform_0(%arg0: i32) -> (i32, i32) {
    %c0_i32 = arith.constant 0 : i32
    %c0_i32_0 = arith.constant 0 : i32
    %c0_i32_1 = arith.constant 0 : i32
    return %c0_i32, %c0_i32_0 : i32, i32
  }
  func.func @transform_1(%arg0: i32) -> (i32, i32) {
    %c0_i32 = arith.constant 0 : i32
    %c0_i32_0 = arith.constant 0 : i32
    return %c0_i32, %arg0 : i32, i32
  }
  func.func @transform_2(%arg0: i32) -> (i32, i32) {
    %c0_i32 = arith.constant 0 : i32
    %c0_i32_0 = arith.constant 0 : i32
    return %c0_i32, %arg0 : i32, i32
  }
  func.func @transform_3(%arg0: i32) -> (i32, i32) {
    %c0_i32 = arith.constant 0 : i32
    %c0_i32_0 = arith.constant 0 : i32
    return %c0_i32, %arg0 : i32, i32
  }
}

</mosaic_0001>

<bundles_post_ra>
// kernel: tpu_custom_call.1
= control target key start
LH: loop header
LB: loop body
LE: loop exit
PB: predicated region body
PF: predicated region fallthrough
CT: control target
= control target key end

     0   :  { %8 = vsyncpa [#allocation3], 0  ;;  %s2146_s0 = inlined_call_operand.hbm [shape: f32[2,256], index: 0, kind: input, shape index: {}]   ;;  %s2147_s1 = inlined_call_operand.hbm [shape: bf16[256,4096], index: 1, kind: input, shape index: {}]   ;;  %s2148_s2 = inlined_call_operand.hbm [shape: f32[1,4096], index: 2, kind: input, shape index: {}]   ;;  %s2149_s3 = inlined_call_operand.hbm [shape: f32[2,4096], index: 3, kind: output, shape index: {}]  }
   0x1   :  { %9 = vsyncpa [#allocation6], 0 }
   0x2   :  { %11 = vsyncpa [#allocation6 + $0x1], 0 }
   0x3   :  { %12 = vsyncpa [#allocation4], 0 }
   0x4   :  { %14 = vsyncpa [#allocation4 + $0x1], 0  ;;  %s1797_s12 = smov 0   ;;  %s1799_s13 = smov 0  }
   0x5   :  { %s1801_s14 = smov 0   ;;  %s1803_s15 = smov 0  }
   0x6 LB: > { %s1818_s16 = sadd.s32 1, %s1767_s15   ;;  %s48_s17 = sadd.s32 1, %s1763_s14  ;;  %s1767_s15 = sphi %s1803_s15, %s2168_s15   ;;  %s1763_s14 = sphi %s1801_s14, %s2167_s14   ;;  %s1759_s13 = sphi %s1799_s13, %s2166_s13   ;;  %s1755_s12 = sphi %s1797_s12, %s2165_s12  }
   0x7   : > { %s45_s18 = ssub.s32 %s1767_s15, %s1818_s16  ;;  %p55_p0 = scmp.ne.s32.totalorder %s1763_s14, %s1759_s13 }
   0x8   : > { %p46_p1 = scmp.eq.s32.totalorder %s45_s18, 0  ;;  %p56_p2 = scmp.eq.s32.totalorder %s1767_s15, 0 }
   0x9   : > { %p1577_p3 = scmp.lt.s32.totalorder %s1767_s15, 4  ;;  %s148_s20 = sand.u32 1, %s1767_s15  }
   0xa   : > { %s1828_s19 = scalar_select %p46_p1, %s1763_s14, %s48_s17  }
   0xb   : > { %p57_p4 = por %p56_p2, %p55_p0  ;;  %s150_s21 = sand.u32 1, %s1763_s14  }
   0xc   : > { %s1403_s22 = sshll.u32 %s150_s21, 10  ;;  %s1548_s23 = sshll.u32 %s1767_s15, 9 }
   0xd   : > { %s1841_s26 = scalar_lea.hbm %s2147_s1, %s1548_s23  ;;  %s152_s27 = scalar_lea.vmem [#allocation5], %s1403_s22 }
   0xe   : > { %s159_s28 = sshll.u32 %s152_s27, 4  ;;  %p1843_p5 = pnand %p1577_p3, %p57_p4  ;;  %s1847_s28 = int_to_ptr.vmem [resolvable:$true] %s159_s28 }
   0xf   : > { %s1849_s30 = scalar_lea.sflag [#allocation6], %s148_s20  ;;  %s1617_s4 = scalar_lea.hbm %s1841_s26, 16384 }
  0x10   : > { %p1618_p6 = scmp.ne.s32.totalorder %s1841_s26, %s1617_s4  ;;  %p2150_p7 = pneg %p1843_p5 }
  0x11   : > { %s1622_s7 = scalar_lea.hbm %s2147_s1, 65536  ;;  %p1623_p10 = scmp.lt.s32.totalorder %s1841_s26, %s2147_s1 }
  0x12   : > { %p1620_p8 = pnand %p2150_p7, %p1618_p6  ;;  %p1624_p11 = scmp.lt.s32.totalorder %s1622_s7, %s1617_s4 }
  0x14   : > { %p1621_p9 = pneg %p1620_p8  ;;  %p1625_p12 = por %p1624_p11, %p1623_p10 }
  0x16   : > { %p1626_p13 = pnand %p1625_p12, %p1621_p9 }
  0x18   : > { %1629 = shalt.err (!%p1626_p13)
}
  0x19   : > { %s1630_s10 = scalar_lea.vmem %s1847_s28, 16384  ;;  %s1769_s11 = smov [#allocation5]  }
  0x1a   : > { %p1631_p1 = scmp.ne.s32.totalorder %s1847_s28, %s1630_s10  ;;  %s1635_s17 = sshll.u32 %s1769_s11, 4  ;;  %s1636_s17 = int_to_ptr.vmem [resolvable:$false] %s1635_s17 }
  0x1b   : > { %s1637_s18 = scalar_lea.vmem %s1636_s17, 32768  ;;  %p1638_p4 = scmp.lt.s32.totalorder %s1847_s28, %s1636_s17 }
  0x1c   : > { %p1633_p2 = pnand %p1631_p1, %p2150_p7  ;;  %p1639_p6 = scmp.lt.s32.totalorder %s1637_s18, %s1630_s10 }
  0x1e   : > { %p1634_p3 = pneg %p1633_p2  ;;  %p1640_p8 = por %p1639_p6, %p1638_p4 }
  0x20   : > { %p1641_p10 = pnand %p1640_p8, %p1634_p3 }
  0x22   : > { %1644 = shalt.err (!%p1641_p10)
}
  0x23   : > { %s1770_s20 = smov 2048   ;;  %s1771_s22 = smov 512  }
  0x24   : > { %s1772_s23 = smov 32   ;;  %s1877_s24 = sadd.s32 4294967295, %s1767_s15  }
  0x25   : > { %1568 = dma.hbm_to_vmem [thread:$0]  (!%p1843_p5), %s1841_s26, 16384, %s1847_s28, %s1849_s30, %s1770_s20, %s1771_s22, %s1772_s23  }
  0x26   : > { %s1399_s25 = sadd.s32 4294967294, %s1767_s15   ;;  %p61_p9 = scmp.ne.s32.totalorder %s1759_s13, %s1755_s12 }
  0x27   : > { %p2152_p11 = scmp.eq.s32.totalorder %s1877_s24, 0  ;;  %p111_p12 = scmp.eq.s32.totalorder %s1877_s24, 3 }
  0x28   : > { %p117_p13 = scmp.eq.s32.totalorder %s1399_s25, 3  ;;  %p1400_p1 = scmp.ge.s32.totalorder %s1767_s15, 1 }
  0x29   : > { %p1887_p2 = por %p2152_p11, %p61_p9  ;;  %p1894_p3 = por %p111_p12, %p55_p0 }
  0x2a   : > { %p1898_p4 = por %p117_p13, %p61_p9  ;;  %p124_p6 = scmp.lt.s32.totalorder %s1767_s15, 5 }
  0x2b   : > { %s2155_s27 = scalar_select %p1887_p2, 1, 0 }
  0x2c   : > { %s2156_s26 = scalar_select %p1894_p3, 1, 0 }
  0x2d   : > { %s2157_s28 = scalar_select %p1898_p4, 1, 0 }
  0x2e   : > { %p1903_p8 = pnand %p1400_p1, %p124_p6  ;;  %s1773_s5 = smov [#allocation2]  }
  0x2f   : > { %s137_s6 = sshll.u32 %s1773_s5, 4  ;;  %s1406_s7 = sshll.u32 %s150_s21, 3  ;;  %s138_s6 = int_to_ptr.vmem [resolvable:$true] %s137_s6 }
  0x30   : > { %p1561_p10 = pneg %p1903_p8  ;;  %s1549_s8 = sshll.u32 %s1767_s15, 7 }
  0x31   : > { %s173_s9 = scalar_lea.vmem [#allocation7], %s1406_s7  ;;  %s1917_s18 = scalar_lea.hbm %s2148_s2, %s1549_s8 }
  0x32   : > { %s181_s10 = sshll.u32 %s173_s9, 4  ;;  %p1562_p0 = pnand %p1561_p10, %p2152_p11  ;;  %s1919_s10 = int_to_ptr.vmem [resolvable:$true] %s181_s10 }
  0x33   : > { %s1656_s20 = scalar_lea.vmem %s138_s6, 64  ;;  %p1664_p6 = scmp.lt.s32.totalorder %s138_s6, %s138_s6 }
  0x34   : > { %p1647_p9 = pneg %p1562_p0  ;;  %p1657_p12 = scmp.ne.s32.totalorder %s138_s6, %s1656_s20 }
  0x35   : > { %p1665_p7 = scmp.lt.s32.totalorder %s1656_s20, %s1656_s20 }
  0x36   : > { %p1659_p13 = pnand %p1657_p12, %p1647_p9 }
  0x37   : > { %p1666_p4 = por %p1665_p7, %p1664_p6 }
  0x38   : > { %p1660_p1 = pneg %p1659_p13 }
  0x3a   : > { %p1667_p3 = pnand %p1666_p4, %p1660_p1 }
  0x3c   : > { %1670 = shalt.err (!%p1667_p3)
}
  0x3d   : > { %1564 = dma.hbm_to_vmem [thread:$0]  (!%p1562_p0), %s2146_s0, 64, %s138_s6, [#allocation3]  }
  0x3e   : > { %s1671_s23 = scalar_lea.hbm %s1917_s18, 128  ;;  %p2159_p11 = pneg %p1843_p5 }
  0x3f   : > { %p1672_p10 = scmp.ne.s32.totalorder %s1917_s18, %s1671_s23  ;;  %s1676_s7 = scalar_lea.hbm %s2148_s2, 512 }
  0x40   : > { %p1677_p7 = scmp.lt.s32.totalorder %s1917_s18, %s2148_s2  ;;  %p1678_p3 = scmp.lt.s32.totalorder %s1676_s7, %s1671_s23 }
  0x41   : > { %p1674_p2 = pnand %p1672_p10, %p2159_p11 }
  0x42   : > { %p1679_p4 = por %p1678_p3, %p1677_p7 }
  0x43   : > { %p1675_p9 = pneg %p1674_p2 }
  0x45   : > { %p1680_p12 = pnand %p1679_p4, %p1675_p9 }
  0x47   : > { %1683 = shalt.err (!%p1680_p12)
}
  0x48   : > { %s1684_s6 = scalar_lea.vmem %s1919_s10, 128  ;;  %s1774_s11 = smov [#allocation7]  }
  0x49   : > { %p1685_p0 = scmp.ne.s32.totalorder %s1919_s10, %s1684_s6  ;;  %s1689_s17 = sshll.u32 %s1774_s11, 4  ;;  %s1690_s17 = int_to_ptr.vmem [resolvable:$false] %s1689_s17 }
  0x4a   : > { %s1691_s20 = scalar_lea.vmem %s1690_s17, 256  ;;  %p1692_p1 = scmp.lt.s32.totalorder %s1919_s10, %s1690_s17 }
  0x4b   : > { %p1687_p2 = pnand %p1685_p0, %p2159_p11  ;;  %p1693_p6 = scmp.lt.s32.totalorder %s1691_s20, %s1684_s6 }
  0x4d   : > { %p1688_p13 = pneg %p1687_p2  ;;  %p1694_p10 = por %p1693_p6, %p1692_p1 }
  0x4f   : > { %p1695_p7 = pnand %p1694_p10, %p1688_p13 }
  0x51   : > { %1698 = shalt.err (!%p1695_p7)
}
  0x52   : > { %1571 = dma.hbm_to_vmem [thread:$0]  (!%p1843_p5), %s1917_s18, 128, %s1919_s10, %s1849_s30  }
  0x53   : > { %190 = sbr.rel (%p1903_p8) target bundleno = 444 (0x1bc), region = 32  ;;  %p2160_p9 = scmp.eq.s32.totalorder (!%p1903_p8), %s1877_s24, 0 }
  0x58   : > { %1742 = dma.done.wait (%p2160_p9), [#allocation3], 64   ;;  %p2161_p3 = pmov %p2160_p9 }
  0x59   : > { %s196_s21 = sand.u32 1, %s1877_s24   ;;  %s1955_s22 = sand.u32 1, %s1759_s13  }
  0x5a   : > { %1744 = vsyncadd (%p2161_p3), [#allocation3], 4294967232  ;;  %s1411_s29 = sshll.u32 %s1955_s22, 10  ;;  %s197_s23 = scalar_lea.sflag [#allocation6], %s196_s21 }
  0x5b   : > { %s1958_s25 = scalar_lea.vmem [#allocation5], %s1411_s29  ;;  %p2162_p5 = scmp.ne.s32.totalorder %s2155_s27, 0 }
  0x5d   : > { %1746 = dma.done.wait (%p2162_p5), %s197_s23, 16512  }
  0x5e   : > { %1748 = vsyncadd (%p2162_p5), %s197_s23, 4294950784  ;;  %v310_v0 = vld [vmem:[%s1958_s25 + $0x1c0] sm:$0xff]  ;;  %v311_v2 = vld [vmem:[%s1958_s25 + $0x1c8] sm:$0xff]  ;;  %s1412_s30 = sshll.u32 %s1955_s22, 3  ;;  %s1413_s4 = sshll.u32 %s1955_s22, 4 }
  0x5f   : > { %v314_v1 = vld [vmem:[%s1958_s25 + $0x1e0] sm:$0xff]  ;;  %v315_v4 = vld [vmem:[%s1958_s25 + $0x1e8] sm:$0xff]  ;;  %v1992_v53 = vld.sshfl [vmem:[#allocation2] sm:$0x33 pattern:$0x76325410] }
  0x60   : > { %v1472_v3 = vcombine.high %v310_v0, %v314_v1  ;;  %v1471_v5 = vcombine.low %v310_v0, %v314_v1  ;;  %v302_v6 = vld [vmem:[%s1958_s25 + $0x180] sm:$0xff]  ;;  %v1474_v8 = vcombine.high %v311_v2, %v315_v4  ;;  %v1473_v9 = vcombine.low %v311_v2, %v315_v4  ;;  %v303_v11 = vld [vmem:[%s1958_s25 + $0x188] sm:$0xff]  ;;  %s209_s27 = scalar_lea.vmem [#allocation7], %s1412_s30  ;;  %s236_s10 = scalar_lea.vmem [#allocation8], %s1413_s4 }
  0x61   : > { %v306_v7 = vld [vmem:[%s1958_s25 + $0x1a0] sm:$0xff]  ;;  %v307_v12 = vld [vmem:[%s1958_s25 + $0x1a8] sm:$0xff]  ;;  %v249_v57 = vcombine.high %v1992_v53, %v1992_v53  ;;  %s1550_s18 = sshll.u32 %s1877_s24, 8  ;;  %s1297_s5 = sshll.u32 %s236_s10, 4  ;;  %s1298_s5 = int_to_ptr.vmem [resolvable:$true] %s1297_s5 }
  0x62   : > { %v1464_v10 = vcombine.high %v302_v6, %v306_v7  ;;  %v294_v13 = vld [vmem:[%s1958_s25 + $0x140] sm:$0xff]  ;;  %1064 = vmatprep.subr.bf16.mxu0 %v1472_v3  ;;  %v1466_v14 = vcombine.high %v303_v11, %v307_v12  ;;  %v295_v16 = vld [vmem:[%s1958_s25 + $0x148] sm:$0xff]  ;;  %1105 = vmatprep.subr.bf16.mxu1 %v1474_v8  ;;  %v1463_v18 = vcombine.low %v302_v6, %v306_v7  ;;  %s1295_s9 = scalar_lea.hbm %s2149_s3, %s1550_s18  ;;  %s1283_s6 = scalar_lea.sflag [#allocation4], %s1955_s22 }
  0x63   : > { %v298_v15 = vld [vmem:[%s1958_s25 + $0x160] sm:$0xff]  ;;  %v299_v17 = vld [vmem:[%s1958_s25 + $0x168] sm:$0xff]  ;;  %1065 = vmatpush1.bf16.msra.mxu0 %v1471_v5  ;;  %1106 = vmatpush1.bf16.msra.mxu1 %v1473_v9  ;;  %v1465_v19 = vcombine.low %v303_v11, %v307_v12  ;;  %v2000_v61 = vpack.c.bf16 %v249_v57, %v249_v57  ;;  %s1699_s11 = scalar_lea.vmem %s1298_s5, 256  ;;  %p2163_p4 = scmp.ne.s32.totalorder %s2156_s26, 0 }
  0x64   : > { %1066 = vmatprep.subr.bf16.mxu0 %v1464_v10  ;;  %v1456_v20 = vcombine.high %v294_v13, %v298_v15  ;;  %1107 = vmatprep.subr.bf16.mxu1 %v1466_v14  ;;  %v1458_v21 = vcombine.high %v295_v16, %v299_v17  ;;  %v286_v22 = vld [vmem:[%s1958_s25 + $0x100] sm:$0xff]  ;;  %v287_v24 = vld [vmem:[%s1958_s25 + $0x108] sm:$0xff]  ;;  %v1455_v26 = vcombine.low %v294_v13, %v298_v15  ;;  %p1700_p8 = scmp.ne.s32.totalorder %s1298_s5, %s1699_s11  ;;  %s1776_s17 = smov [#allocation8]  }
  0x65   : > { %v290_v23 = vld [vmem:[%s1958_s25 + $0x120] sm:$0xff]  ;;  %v291_v25 = vld [vmem:[%s1958_s25 + $0x128] sm:$0xff]  ;;  %v1457_v27 = vcombine.low %v295_v16, %v299_v17  ;;  %1096 = vmatprep.mubr.bf16.mxu0 %v2000_v61  ;;  %1137 = vmatprep.mubr.bf16.mxu1 %v2000_v61  ;;  %s1703_s20 = sshll.u32 %s1776_s17, 4  ;;  %s1704_s20 = int_to_ptr.vmem [resolvable:$false] %s1703_s20 }
  0x66   : > { %v1448_v28 = vcombine.high %v286_v22, %v290_v23  ;;  %v1450_v29 = vcombine.high %v287_v24, %v291_v25  ;;  %v278_v30 = vld [vmem:[%s1958_s25 + $0xc0] sm:$0xff]  ;;  %v279_v32 = vld [vmem:[%s1958_s25 + $0xc8] sm:$0xff]  ;;  %v1447_v34 = vcombine.low %v286_v22, %v290_v23  ;;  %v1449_v35 = vcombine.low %v287_v24, %v291_v25  ;;  %p1701_p12 = pnand %p1700_p8, %p2163_p4  ;;  %s1705_s21 = scalar_lea.vmem %s1704_s20, 512 }
  0x67   : > { %1067 = vmatpush1.bf16.msra.mxu0 %v1463_v18  ;;  %1108 = vmatpush1.bf16.msra.mxu1 %v1465_v19  ;;  %v282_v31 = vld [vmem:[%s1958_s25 + $0xe0] sm:$0xff]  ;;  %v283_v33 = vld [vmem:[%s1958_s25 + $0xe8] sm:$0xff]  ;;  %p1706_p11 = scmp.lt.s32.totalorder %s1298_s5, %s1704_s20  ;;  %p1707_p2 = scmp.lt.s32.totalorder %s1705_s21, %s1699_s11 }
  0x68   : > { %1068 = vmatprep.subr.bf16.mxu0 %v1456_v20  ;;  %1109 = vmatprep.subr.bf16.mxu1 %v1458_v21  ;;  %v1440_v36 = vcombine.high %v278_v30, %v282_v31  ;;  %v1442_v37 = vcombine.high %v279_v32, %v283_v33  ;;  %v270_v38 = vld [vmem:[%s1958_s25 + $0x80] sm:$0xff]  ;;  %v271_v40 = vld [vmem:[%s1958_s25 + $0x88] sm:$0xff]  ;;  %v1439_v42 = vcombine.low %v278_v30, %v282_v31  ;;  %p1702_p0 = pneg %p1701_p12 }
  0x69   : > { %v274_v39 = vld [vmem:[%s1958_s25 + $0xa0] sm:$0xff]  ;;  %v275_v41 = vld [vmem:[%s1958_s25 + $0xa8] sm:$0xff]  ;;  %v1441_v43 = vcombine.low %v279_v32, %v283_v33  ;;  %p1708_p13 = por %p1707_p2, %p1706_p11 }
  0x6a   : > { %v1432_v44 = vcombine.high %v270_v38, %v274_v39  ;;  %v1434_v45 = vcombine.high %v271_v40, %v275_v41  ;;  %v262_v46 = vld [vmem:[%s1958_s25 + $0x40] sm:$0xff]  ;;  %v263_v48 = vld [vmem:[%s1958_s25 + $0x48] sm:$0xff]  ;;  %v1431_v50 = vcombine.low %v270_v38, %v274_v39  ;;  %v1433_v51 = vcombine.low %v271_v40, %v275_v41 }
  0x6b   : > { %1069 = vmatpush1.bf16.msra.mxu0 %v1455_v26  ;;  %1110 = vmatpush1.bf16.msra.mxu1 %v1457_v27  ;;  %v266_v47 = vld [vmem:[%s1958_s25 + $0x60] sm:$0xff]  ;;  %v267_v49 = vld [vmem:[%s1958_s25 + $0x68] sm:$0xff]  ;;  %p1709_p1 = pnand %p1708_p13, %p1702_p0 }
  0x6c   : > { %1070 = vmatprep.subr.bf16.mxu0 %v1448_v28  ;;  %1111 = vmatprep.subr.bf16.mxu1 %v1450_v29  ;;  %v1424_v52 = vcombine.high %v262_v46, %v266_v47  ;;  %v1426_v54 = vcombine.high %v263_v48, %v267_v49  ;;  %v254_v55 = vld [vmem:[%s1958_s25] sm:$0xff]  ;;  %v255_v58 = vld [vmem:[%s1958_s25 + $0x8] sm:$0xff]  ;;  %v1423_v60 = vcombine.low %v262_v46, %v266_v47 }
  0x6d   : > { %v258_v56 = vld [vmem:[%s1958_s25 + $0x20] sm:$0xff]  ;;  %v259_v59 = vld [vmem:[%s1958_s25 + $0x28] sm:$0xff]  ;;  %v1425_v62 = vcombine.low %v263_v48, %v267_v49 }
  0x6e   : > { %v1416_v63 = vcombine.high %v254_v55, %v258_v56  ;;  %v1418_v0 = vcombine.high %v255_v58, %v259_v59  ;;  %v374_v1 = vld [vmem:[%s1958_s25 + $0x3c0] sm:$0xff]  ;;  %v375_v3 = vld [vmem:[%s1958_s25 + $0x3c8] sm:$0xff]  ;;  %v1415_v5 = vcombine.low %v254_v55, %v258_v56  ;;  %v1417_v6 = vcombine.low %v255_v58, %v259_v59 }
  0x6f   : > { %1071 = vmatpush1.bf16.msra.mxu0 %v1447_v34  ;;  %1112 = vmatpush1.bf16.msra.mxu1 %v1449_v35  ;;  %v378_v2 = vld [vmem:[%s1958_s25 + $0x3e0] sm:$0xff]  ;;  %v379_v4 = vld [vmem:[%s1958_s25 + $0x3e8] sm:$0xff] }
  0x70   : > { %1072 = vmatprep.subr.bf16.mxu0 %v1440_v36  ;;  %1113 = vmatprep.subr.bf16.mxu1 %v1442_v37  ;;  %v1536_v7 = vcombine.high %v374_v1, %v378_v2  ;;  %v1538_v8 = vcombine.high %v375_v3, %v379_v4  ;;  %v366_v9 = vld [vmem:[%s1958_s25 + $0x380] sm:$0xff]  ;;  %v367_v11 = vld [vmem:[%s1958_s25 + $0x388] sm:$0xff]  ;;  %v1535_v13 = vcombine.low %v374_v1, %v378_v2 }
  0x71   : > { %v370_v10 = vld [vmem:[%s1958_s25 + $0x3a0] sm:$0xff]  ;;  %v371_v12 = vld [vmem:[%s1958_s25 + $0x3a8] sm:$0xff]  ;;  %v1537_v14 = vcombine.low %v375_v3, %v379_v4  ;;  %v312_v3 = vld [vmem:[%s1958_s25 + $0x1d0] sm:$0xff] }
  0x72   : > { %v1528_v15 = vcombine.high %v366_v9, %v370_v10  ;;  %v1530_v16 = vcombine.high %v367_v11, %v371_v12  ;;  %v358_v17 = vld [vmem:[%s1958_s25 + $0x340] sm:$0xff]  ;;  %v359_v19 = vld [vmem:[%s1958_s25 + $0x348] sm:$0xff]  ;;  %v1527_v21 = vcombine.low %v366_v9, %v370_v10  ;;  %v1529_v22 = vcombine.low %v367_v11, %v371_v12  ;;  %v316_v4 = vld [vmem:[%s1958_s25 + $0x1f0] sm:$0xff] }
  0x73   : > { %1073 = vmatpush1.bf16.msra.mxu0 %v1439_v42  ;;  %1114 = vmatpush1.bf16.msra.mxu1 %v1441_v43  ;;  %v362_v18 = vld [vmem:[%s1958_s25 + $0x360] sm:$0xff]  ;;  %v363_v20 = vld [vmem:[%s1958_s25 + $0x368] sm:$0xff]  ;;  %v1476_v9 = vcombine.high %v312_v3, %v316_v4  ;;  %v304_v11 = vld [vmem:[%s1958_s25 + $0x190] sm:$0xff] }
  0x74   : > { %1074 = vmatprep.subr.bf16.mxu0 %v1432_v44  ;;  %1115 = vmatprep.subr.bf16.mxu1 %v1434_v45  ;;  %v1520_v23 = vcombine.high %v358_v17, %v362_v18  ;;  %v1522_v24 = vcombine.high %v359_v19, %v363_v20  ;;  %v350_v25 = vld [vmem:[%s1958_s25 + $0x300] sm:$0xff]  ;;  %v351_v27 = vld [vmem:[%s1958_s25 + $0x308] sm:$0xff]  ;;  %v1519_v29 = vcombine.low %v358_v17, %v362_v18  ;;  %v308_v12 = vld [vmem:[%s1958_s25 + $0x1b0] sm:$0xff] }
  0x75   : > { %v354_v26 = vld [vmem:[%s1958_s25 + $0x320] sm:$0xff]  ;;  %v355_v28 = vld [vmem:[%s1958_s25 + $0x328] sm:$0xff]  ;;  %v1521_v30 = vcombine.low %v359_v19, %v363_v20  ;;  %v1468_v18 = vcombine.high %v304_v11, %v308_v12  ;;  %v296_v20 = vld [vmem:[%s1958_s25 + $0x150] sm:$0xff] }
  0x76   : > { %v1512_v31 = vcombine.high %v350_v25, %v354_v26  ;;  %v1514_v32 = vcombine.high %v351_v27, %v355_v28  ;;  %v342_v33 = vld [vmem:[%s1958_s25 + $0x2c0] sm:$0xff]  ;;  %v343_v35 = vld [vmem:[%s1958_s25 + $0x2c8] sm:$0xff]  ;;  %v1511_v37 = vcombine.low %v350_v25, %v354_v26  ;;  %v1513_v38 = vcombine.low %v351_v27, %v355_v28  ;;  %v288_v27 = vld [vmem:[%s1958_s25 + $0x110] sm:$0xff] }
  0x77   : > { %1075 = vmatpush1.bf16.msra.mxu0 %v1431_v50  ;;  %1116 = vmatpush1.bf16.msra.mxu1 %v1433_v51  ;;  %v346_v34 = vld [vmem:[%s1958_s25 + $0x2e0] sm:$0xff]  ;;  %v347_v36 = vld [vmem:[%s1958_s25 + $0x2e8] sm:$0xff]  ;;  %v292_v28 = vld [vmem:[%s1958_s25 + $0x130] sm:$0xff] }
  0x78   : > { %1076 = vmatprep.subr.bf16.mxu0 %v1424_v52  ;;  %1117 = vmatprep.subr.bf16.mxu1 %v1426_v54  ;;  %v1504_v39 = vcombine.high %v342_v33, %v346_v34  ;;  %v1506_v40 = vcombine.high %v343_v35, %v347_v36  ;;  %v334_v41 = vld [vmem:[%s1958_s25 + $0x280] sm:$0xff]  ;;  %v335_v43 = vld [vmem:[%s1958_s25 + $0x288] sm:$0xff]  ;;  %v1503_v45 = vcombine.low %v342_v33, %v346_v34 }
  0x79   : > { %v338_v42 = vld [vmem:[%s1958_s25 + $0x2a0] sm:$0xff]  ;;  %v339_v44 = vld [vmem:[%s1958_s25 + $0x2a8] sm:$0xff]  ;;  %v1505_v46 = vcombine.low %v343_v35, %v347_v36  ;;  %v1452_v33 = vcombine.high %v288_v27, %v292_v28  ;;  %v280_v35 = vld [vmem:[%s1958_s25 + $0xd0] sm:$0xff] }
  0x7a   : > { %v1496_v47 = vcombine.high %v334_v41, %v338_v42  ;;  %v1498_v48 = vcombine.high %v335_v43, %v339_v44  ;;  %v326_v49 = vld [vmem:[%s1958_s25 + $0x240] sm:$0xff]  ;;  %v327_v51 = vld [vmem:[%s1958_s25 + $0x248] sm:$0xff]  ;;  %v1495_v54 = vcombine.low %v334_v41, %v338_v42  ;;  %v1497_v55 = vcombine.low %v335_v43, %v339_v44  ;;  %v284_v36 = vld [vmem:[%s1958_s25 + $0xf0] sm:$0xff] }
  0x7b   : > { %1077 = vmatpush1.bf16.msra.mxu0 %v1423_v60  ;;  %1118 = vmatpush1.bf16.msra.mxu1 %v1425_v62  ;;  %v330_v50 = vld [vmem:[%s1958_s25 + $0x260] sm:$0xff]  ;;  %v331_v52 = vld [vmem:[%s1958_s25 + $0x268] sm:$0xff]  ;;  %v272_v42 = vld [vmem:[%s1958_s25 + $0x90] sm:$0xff] }
  0x7c   : > { %1078 = vmatprep.subr.bf16.mxu0 %v1416_v63  ;;  %1119 = vmatprep.subr.bf16.mxu1 %v1418_v0  ;;  %v1488_v56 = vcombine.high %v326_v49, %v330_v50  ;;  %v1490_v57 = vcombine.high %v327_v51, %v331_v52  ;;  %v318_v58 = vld [vmem:[%s1958_s25 + $0x200] sm:$0xff]  ;;  %v319_v60 = vld [vmem:[%s1958_s25 + $0x208] sm:$0xff]  ;;  %v1487_v63 = vcombine.low %v326_v49, %v330_v50  ;;  %v276_v43 = vld [vmem:[%s1958_s25 + $0xb0] sm:$0xff] }
  0x7d   : > { %v322_v59 = vld [vmem:[%s1958_s25 + $0x220] sm:$0xff]  ;;  %v323_v62 = vld [vmem:[%s1958_s25 + $0x228] sm:$0xff]  ;;  %v1489_v0 = vcombine.low %v327_v51, %v331_v52  ;;  %v273_v44 = vld [vmem:[%s1958_s25 + $0x98] sm:$0xff] }
  0x7e   : > { %v1480_v1 = vcombine.high %v318_v58, %v322_v59  ;;  %v1482_v2 = vcombine.high %v319_v60, %v323_v62  ;;  %v264_v50 = vld [vmem:[%s1958_s25 + $0x50] sm:$0xff]  ;;  %v265_v52 = vld [vmem:[%s1958_s25 + $0x58] sm:$0xff] }
  0x7f   : > { %1079 = vmatpush1.bf16.msra.mxu0 %v1415_v5  ;;  %1120 = vmatpush1.bf16.msra.mxu1 %v1417_v6  ;;  %v313_v5 = vld [vmem:[%s1958_s25 + $0x1d8] sm:$0xff]  ;;  %v268_v51 = vld [vmem:[%s1958_s25 + $0x70] sm:$0xff] }
  0x80   : > { %1080 = vmatprep.subr.bf16.mxu0 %v1536_v7  ;;  %1121 = vmatprep.subr.bf16.mxu1 %v1538_v8  ;;  %v317_v6 = vld [vmem:[%s1958_s25 + $0x1f8] sm:$0xff]  ;;  %v1479_v7 = vcombine.low %v318_v58, %v322_v59  ;;  %v1481_v8 = vcombine.low %v319_v60, %v323_v62  ;;  %v256_v59 = vld [vmem:[%s1958_s25 + $0x10] sm:$0xff] }
  0x81   : > { %v1478_v10 = vcombine.high %v313_v5, %v317_v6  ;;  %v1477_v17 = vcombine.low %v313_v5, %v317_v6  ;;  %v260_v60 = vld [vmem:[%s1958_s25 + $0x30] sm:$0xff]  ;;  %v257_v62 = vld [vmem:[%s1958_s25 + $0x18] sm:$0xff] }
  0x82   : > { %v380_v5 = vld [vmem:[%s1958_s25 + $0x3f0] sm:$0xff]  ;;  %v377_v6 = vld [vmem:[%s1958_s25 + $0x3d8] sm:$0xff] }
  0x83   : > { %1081 = vmatpush2.bf16.msra.mxu0 %v1535_v13  ;;  %1122 = vmatpush2.bf16.msra.mxu1 %v1537_v14  ;;  %v2044_v13 = vpack.c.bf16 %v1992_v53, %v1992_v53  ;;  %v305_v14 = vld [vmem:[%s1958_s25 + $0x198] sm:$0xff] }
  0x84   : > { %1082 = vmatprep.subr.bf16.mxu0 %v1528_v15  ;;  %1123 = vmatprep.subr.bf16.mxu1 %v1530_v16  ;;  %v309_v15 = vld [vmem:[%s1958_s25 + $0x1b8] sm:$0xff]  ;;  %v1475_v16 = vcombine.low %v312_v3, %v316_v4  ;;  %v376_v4 = vld [vmem:[%s1958_s25 + $0x3d0] sm:$0xff] }
  0x85   : > { %v1470_v19 = vcombine.high %v305_v14, %v309_v15  ;;  %v297_v53 = vld [vmem:[%s1958_s25 + $0x158] sm:$0xff] }
  0x87   : > { %1083 = vmatpush2.bf16.msra.mxu0 %v1527_v21  ;;  %1124 = vmatpush2.bf16.msra.mxu1 %v1529_v22  ;;  %v300_v21 = vld [vmem:[%s1958_s25 + $0x170] sm:$0xff]  ;;  %v301_v22 = vld [vmem:[%s1958_s25 + $0x178] sm:$0xff] }
  0x88   : > { %1084 = vmatprep.subr.bf16.mxu0 %v1520_v23  ;;  %1125 = vmatprep.subr.bf16.mxu1 %v1522_v24  ;;  %v1467_v23 = vcombine.low %v304_v11, %v308_v12  ;;  %v1469_v24 = vcombine.low %v305_v14, %v309_v15  ;;  %v1460_v25 = vcombine.high %v296_v20, %v300_v21  ;;  %v368_v12 = vld [vmem:[%s1958_s25 + $0x390] sm:$0xff]  ;;  %v369_v15 = vld [vmem:[%s1958_s25 + $0x398] sm:$0xff] }
  0x89   : > { %v1462_v26 = vcombine.high %v297_v53, %v301_v22  ;;  %v372_v14 = vld [vmem:[%s1958_s25 + $0x3b0] sm:$0xff] }
  0x8b   : > { %1085 = vmatpush2.bf16.msra.mxu0 %v1519_v29  ;;  %1126 = vmatpush2.bf16.msra.mxu1 %v1521_v30  ;;  %v289_v29 = vld [vmem:[%s1958_s25 + $0x118] sm:$0xff] }
  0x8c   : > { %1086 = vmatprep.subr.bf16.mxu0 %v1512_v31  ;;  %1127 = vmatprep.subr.bf16.mxu1 %v1514_v32  ;;  %v293_v30 = vld [vmem:[%s1958_s25 + $0x138] sm:$0xff]  ;;  %v1459_v31 = vcombine.low %v296_v20, %v300_v21  ;;  %v1461_v32 = vcombine.low %v297_v53, %v301_v22  ;;  %v360_v21 = vld [vmem:[%s1958_s25 + $0x350] sm:$0xff] }
  0x8d   : > { %v1454_v34 = vcombine.high %v289_v29, %v293_v30  ;;  %v364_v53 = vld [vmem:[%s1958_s25 + $0x370] sm:$0xff]  ;;  %v361_v22 = vld [vmem:[%s1958_s25 + $0x358] sm:$0xff] }
  0x8f   : > { %1087 = vmatpush2.bf16.msra.mxu0 %v1511_v37  ;;  %1128 = vmatpush2.bf16.msra.mxu1 %v1513_v38  ;;  %v281_v37 = vld [vmem:[%s1958_s25 + $0xd8] sm:$0xff] }
  0x90   : > { %1088 = vmatprep.subr.bf16.mxu0 %v1504_v39  ;;  %1129 = vmatprep.subr.bf16.mxu1 %v1506_v40  ;;  %v285_v38 = vld [vmem:[%s1958_s25 + $0xf8] sm:$0xff]  ;;  %v1451_v39 = vcombine.low %v288_v27, %v292_v28  ;;  %v1444_v40 = vcombine.high %v280_v35, %v284_v36  ;;  %v352_v28 = vld [vmem:[%s1958_s25 + $0x310] sm:$0xff] }
  0x91   : > { %v1446_v41 = vcombine.high %v281_v37, %v285_v38 }
  0x93   : > { %1089 = vmatpush2.bf16.msra.mxu0 %v1503_v45  ;;  %1130 = vmatpush2.bf16.msra.mxu1 %v1505_v46  ;;  %v277_v45 = vld [vmem:[%s1958_s25 + $0xb8] sm:$0xff]  ;;  %v1443_v46 = vcombine.low %v280_v35, %v284_v36  ;;  %v344_v36 = vld [vmem:[%s1958_s25 + $0x2d0] sm:$0xff] }
  0x94   : > { %1090 = vmatprep.subr.bf16.mxu0 %v1496_v47  ;;  %1131 = vmatprep.subr.bf16.mxu1 %v1498_v48  ;;  %v1445_v47 = vcombine.low %v281_v37, %v285_v38  ;;  %v1436_v48 = vcombine.high %v272_v42, %v276_v43  ;;  %v1438_v49 = vcombine.high %v273_v44, %v277_v45  ;;  %v348_v37 = vld [vmem:[%s1958_s25 + $0x2f0] sm:$0xff]  ;;  %v345_v38 = vld [vmem:[%s1958_s25 + $0x2d8] sm:$0xff] }
  0x97   : > { %1091 = vmatpush2.bf16.msra.mxu0 %v1495_v54  ;;  %1132 = vmatpush2.bf16.msra.mxu1 %v1497_v55  ;;  %v269_v54 = vld [vmem:[%s1958_s25 + $0x78] sm:$0xff]  ;;  %v1435_v55 = vcombine.low %v272_v42, %v276_v43  ;;  %v336_v43 = vld [vmem:[%s1958_s25 + $0x290] sm:$0xff] }
  0x98   : > { %1092 = vmatprep.subr.bf16.mxu0 %v1488_v56  ;;  %1133 = vmatprep.subr.bf16.mxu1 %v1490_v57  ;;  %v1437_v56 = vcombine.low %v273_v44, %v277_v45  ;;  %v1428_v57 = vcombine.high %v264_v50, %v268_v51  ;;  %v1430_v58 = vcombine.high %v265_v52, %v269_v54  ;;  %v340_v44 = vld [vmem:[%s1958_s25 + $0x2b0] sm:$0xff]  ;;  %v337_v45 = vld [vmem:[%s1958_s25 + $0x298] sm:$0xff] }
  0x9b   : > { %1093 = vmatpush2.bf16.msra.mxu0 %v1487_v63  ;;  %1134 = vmatpush2.bf16.msra.mxu1 %v1489_v0  ;;  %v261_v63 = vld [vmem:[%s1958_s25 + $0x38] sm:$0xff]  ;;  %v1427_v0 = vcombine.low %v264_v50, %v268_v51  ;;  %v328_v51 = vld [vmem:[%s1958_s25 + $0x250] sm:$0xff] }
  0x9c   : > { %1094 = vmatprep.subr.bf16.mxu0 %v1480_v1  ;;  %1135 = vmatprep.subr.bf16.mxu1 %v1482_v2  ;;  %v1429_v1 = vcombine.low %v265_v52, %v269_v54  ;;  %v1420_v2 = vcombine.high %v256_v59, %v260_v60  ;;  %v1422_v3 = vcombine.high %v257_v62, %v261_v63  ;;  %v332_v52 = vld [vmem:[%s1958_s25 + $0x270] sm:$0xff]  ;;  %v329_v54 = vld [vmem:[%s1958_s25 + $0x258] sm:$0xff] }
  0x9f   : > { %1095 = vmatpush2.bf16.msra.mxu0 %v1479_v7  ;;  %1136 = vmatpush2.bf16.msra.mxu1 %v1481_v8  ;;  %v381_v7 = vld [vmem:[%s1958_s25 + $0x3f8] sm:$0xff]  ;;  %v1419_v8 = vcombine.low %v256_v59, %v260_v60  ;;  %v320_v60 = vld [vmem:[%s1958_s25 + $0x210] sm:$0xff] }
  0xa0   : > { %1146 = vmatprep.subr.bf16.mxu0 %v1476_v9  ;;  %1187 = vmatprep.subr.bf16.mxu1 %v1478_v10  ;;  %v1421_v9 = vcombine.low %v257_v62, %v261_v63  ;;  %v1540_v10 = vcombine.high %v376_v4, %v380_v5  ;;  %v1542_v11 = vcombine.high %v377_v6, %v381_v7  ;;  %v324_v62 = vld [vmem:[%s1958_s25 + $0x230] sm:$0xff]  ;;  %v321_v63 = vld [vmem:[%s1958_s25 + $0x218] sm:$0xff] }
  0xa2   : > { %1097 = vmatmul.mubr.bf16.vlgmr.msra.gmra.mxu0 %v2044_v13  ;;  %1138 = vmatmul.mubr.bf16.vlgmr.msra.gmra.mxu1 %v2044_v13 }
  0xa3   : > { %1147 = vmatpush1.bf16.msra.mxu0 %v1475_v16  ;;  %1188 = vmatpush1.bf16.msra.mxu1 %v1477_v17  ;;  %v373_v16 = vld [vmem:[%s1958_s25 + $0x3b8] sm:$0xff]  ;;  %v1539_v17 = vcombine.low %v376_v4, %v380_v5  ;;  %v1483_v5 = vcombine.low %v320_v60, %v324_v62 }
  0xa4   : > { %1148 = vmatprep.subr.bf16.mxu0 %v1468_v18  ;;  %1189 = vmatprep.subr.bf16.mxu1 %v1470_v19  ;;  %v1541_v18 = vcombine.low %v377_v6, %v381_v7  ;;  %v1532_v19 = vcombine.high %v368_v12, %v372_v14  ;;  %v1534_v20 = vcombine.high %v369_v15, %v373_v16  ;;  %v384_v7 = vlaneseq }
  0xa5   : > { %1178 = vmatprep.mubr.bf16.mxu0 %v2000_v61  ;;  %1219 = vmatprep.mubr.bf16.mxu1 %v2000_v61  ;;  %v1453_v61 = vcombine.low %v289_v29, %v293_v30  ;;  %v356_v29 = vld [vmem:[%s1958_s25 + $0x330] sm:$0xff]  ;;  %v353_v30 = vld [vmem:[%s1958_s25 + $0x318] sm:$0xff] }
  0xa7   : > { %1149 = vmatpush1.bf16.msra.mxu0 %v1467_v23  ;;  %1190 = vmatpush1.bf16.msra.mxu1 %v1469_v24  ;;  %v365_v23 = vld [vmem:[%s1958_s25 + $0x378] sm:$0xff]  ;;  %v1531_v24 = vcombine.low %v368_v12, %v372_v14 }
  0xa8   : > { %1150 = vmatprep.subr.bf16.mxu0 %v1460_v25  ;;  %1191 = vmatprep.subr.bf16.mxu1 %v1462_v26  ;;  %v1533_v25 = vcombine.low %v369_v15, %v373_v16  ;;  %v1524_v26 = vcombine.high %v360_v21, %v364_v53  ;;  %v1526_v27 = vcombine.high %v361_v22, %v365_v23 }
  0xab   : > { %1151 = vmatpush1.bf16.msra.mxu0 %v1459_v31  ;;  %1192 = vmatpush1.bf16.msra.mxu1 %v1461_v32  ;;  %v357_v31 = vld [vmem:[%s1958_s25 + $0x338] sm:$0xff]  ;;  %v1523_v32 = vcombine.low %v360_v21, %v364_v53 }
  0xac   : > { %1152 = vmatprep.subr.bf16.mxu0 %v1452_v33  ;;  %1193 = vmatprep.subr.bf16.mxu1 %v1454_v34  ;;  %v1525_v33 = vcombine.low %v361_v22, %v365_v23  ;;  %v1516_v34 = vcombine.high %v352_v28, %v356_v29  ;;  %v1518_v35 = vcombine.high %v353_v30, %v357_v31  ;;  %v1775_v23 = vmov 1983009808  }
  0xaf   : > { %1153 = vmatpush1.bf16.msra.mxu0 %v1451_v39  ;;  %1194 = vmatpush1.bf16.msra.mxu1 %v1453_v61  ;;  %v349_v39 = vld [vmem:[%s1958_s25 + $0x2f8] sm:$0xff]  ;;  %v1515_v61 = vcombine.low %v352_v28, %v356_v29 }
  0xb0   : > { %1154 = vmatprep.subr.bf16.mxu0 %v1444_v40  ;;  %1195 = vmatprep.subr.bf16.mxu1 %v1446_v41  ;;  %v1517_v40 = vcombine.low %v353_v30, %v357_v31  ;;  %v1508_v41 = vcombine.high %v344_v36, %v348_v37  ;;  %v1510_v42 = vcombine.high %v345_v38, %v349_v39 }
  0xb3   : > { %1155 = vmatpush1.bf16.msra.mxu0 %v1443_v46  ;;  %1196 = vmatpush1.bf16.msra.mxu1 %v1445_v47  ;;  %v341_v46 = vld [vmem:[%s1958_s25 + $0x2b8] sm:$0xff]  ;;  %v1507_v47 = vcombine.low %v344_v36, %v348_v37 }
  0xb4   : > { %1156 = vmatprep.subr.bf16.mxu0 %v1436_v48  ;;  %1197 = vmatprep.subr.bf16.mxu1 %v1438_v49  ;;  %v1509_v48 = vcombine.low %v345_v38, %v349_v39  ;;  %v1500_v49 = vcombine.high %v336_v43, %v340_v44  ;;  %v1502_v50 = vcombine.high %v337_v45, %v341_v46 }
  0xb7   : > { %1157 = vmatpush1.bf16.msra.mxu0 %v1435_v55  ;;  %1198 = vmatpush1.bf16.msra.mxu1 %v1437_v56  ;;  %v333_v55 = vld [vmem:[%s1958_s25 + $0x278] sm:$0xff]  ;;  %v1499_v56 = vcombine.low %v336_v43, %v340_v44 }
  0xb8   : > { %1158 = vmatprep.subr.bf16.mxu0 %v1428_v57  ;;  %1199 = vmatprep.subr.bf16.mxu1 %v1430_v58  ;;  %v1501_v57 = vcombine.low %v337_v45, %v341_v46  ;;  %v1492_v58 = vcombine.high %v328_v51, %v332_v52  ;;  %v1494_v59 = vcombine.high %v329_v54, %v333_v55 }
  0xbb   : > { %1159 = vmatpush1.bf16.msra.mxu0 %v1427_v0  ;;  %1200 = vmatpush1.bf16.msra.mxu1 %v1429_v1  ;;  %v325_v0 = vld [vmem:[%s1958_s25 + $0x238] sm:$0xff]  ;;  %v1491_v1 = vcombine.low %v328_v51, %v332_v52 }
  0xbc   : > { %1160 = vmatprep.subr.bf16.mxu0 %v1420_v2  ;;  %1201 = vmatprep.subr.bf16.mxu1 %v1422_v3  ;;  %v1493_v2 = vcombine.low %v329_v54, %v333_v55  ;;  %v1484_v3 = vcombine.high %v320_v60, %v324_v62  ;;  %v1486_v4 = vcombine.high %v321_v63, %v325_v0 }
  0xbd   : > { %v1485_v6 = vcombine.low %v321_v63, %v325_v0 }
  0xbf   : > { %1161 = vmatpush1.bf16.msra.mxu0 %v1419_v8  ;;  %1202 = vmatpush1.bf16.msra.mxu1 %v1421_v9  ;;  %v385_v8 = vshrl.u32 %v384_v7, 7 }
  0xc0   : > { %1162 = vmatprep.subr.bf16.mxu0 %v1540_v10  ;;  %1203 = vmatprep.subr.bf16.mxu1 %v1542_v11  ;;  %v382_v10 = vld [vmem:[%s209_s27] sm:$0xff] }
  0xc1   : > { %v402_v9 = vsub.s32 4, %v385_v8  ;;  %v410_v12 = vsub.s32 6, %v385_v8  ;;  %v406_v15 = vsub.s32 5, %v385_v8  ;;  %v414_v16 = vsub.s32 7, %v385_v8 }
  0xc2   : > { %v390_v21 = vsub.s32 1, %v385_v8  ;;  %v398_v53 = vsub.s32 3, %v385_v8 }
  0xc3   : > { %1163 = vmatpush2.bf16.msra.mxu0 %v1539_v17  ;;  %1204 = vmatpush2.bf16.msra.mxu1 %v1541_v18  ;;  %v403_v11 = vrot.slane %v382_v10, %v402_v9  ;;  %v411_v14 = vrot.slane %v382_v10, %v410_v12  ;;  %v407_v17 = vrot.slane %v382_v10, %v406_v15 }
  0xc4   : > { %1164 = vmatprep.subr.bf16.mxu0 %v1532_v19  ;;  %1205 = vmatprep.subr.bf16.mxu1 %v1534_v20  ;;  %v415_v18 = vrot.slane %v382_v10, %v414_v16  ;;  %v386_v19 = vsub.s32 0, %v385_v8  ;;  %v394_v20 = vsub.s32 2, %v385_v8 }
  0xc6   : > { %v387_v22 = vrot.slane %v382_v10, %v386_v19 }
  0xc7   : > { %1165 = vmatpush2.bf16.msra.mxu0 %v1531_v24  ;;  %1206 = vmatpush2.bf16.msra.mxu1 %v1533_v25  ;;  %v395_v24 = vrot.slane %v382_v10, %v394_v20  ;;  %v391_v25 = vrot.slane %v382_v10, %v390_v21 }
  0xc8   : > { %1166 = vmatprep.subr.bf16.mxu0 %v1524_v26  ;;  %1207 = vmatprep.subr.bf16.mxu1 %v1526_v27  ;;  %v399_v27 = vrot.slane %v382_v10, %v398_v53 }
  0xcb   : > { %1167 = vmatpush2.bf16.msra.mxu0 %v1523_v32  ;;  %1208 = vmatpush2.bf16.msra.mxu1 %v1525_v33 }
  0xcc   : > { %1168 = vmatprep.subr.bf16.mxu0 %v1516_v34  ;;  %1209 = vmatprep.subr.bf16.mxu1 %v1518_v35 }
  0xcf   : > { %1169 = vmatpush2.bf16.msra.mxu0 %v1515_v61  ;;  %1210 = vmatpush2.bf16.msra.mxu1 %v1517_v40 }
  0xd0   : > { %1170 = vmatprep.subr.bf16.mxu0 %v1508_v41  ;;  %1211 = vmatprep.subr.bf16.mxu1 %v1510_v42 }
  0xd3   : > { %1171 = vmatpush2.bf16.msra.mxu0 %v1507_v47  ;;  %1212 = vmatpush2.bf16.msra.mxu1 %v1509_v48 }
  0xd4   : > { %1172 = vmatprep.subr.bf16.mxu0 %v1500_v49  ;;  %1213 = vmatprep.subr.bf16.mxu1 %v1502_v50 }
  0xd7   : > { %1173 = vmatpush2.bf16.msra.mxu0 %v1499_v56  ;;  %1214 = vmatpush2.bf16.msra.mxu1 %v1501_v57 }
  0xd8   : > { %1174 = vmatprep.subr.bf16.mxu0 %v1492_v58  ;;  %1215 = vmatprep.subr.bf16.mxu1 %v1494_v59 }
  0xdb   : > { %1175 = vmatpush2.bf16.msra.mxu0 %v1491_v1  ;;  %1216 = vmatpush2.bf16.msra.mxu1 %v1493_v2 }
  0xdc   : > { %1176 = vmatprep.subr.bf16.mxu0 %v1484_v3  ;;  %1217 = vmatprep.subr.bf16.mxu1 %v1486_v4 }
  0xdf   : > { %1177 = vmatpush2.bf16.msra.mxu0 %v1483_v5  ;;  %1218 = vmatpush2.bf16.msra.mxu1 %v1485_v6 }
  0xe2   : > { %1179 = vmatmul.mubr.bf16.vlgmr.msra.gmra.mxu0 %v2044_v13  ;;  %1220 = vmatmul.mubr.bf16.vlgmr.msra.gmra.mxu1 %v2044_v13  ;;  %v1247_v13 = vunpack.c.l.s4 %v1775_v23 }
  0xe4   : > { %v1248_v30 = vunpack.c.0.s8 %v1247_v13 }
  0xe6   : > { %v1251_v61 = vsub.s32 %v1248_v30, %v385_v8 }
 0x162   : > { %v1098_v26 = vpop.f32.mrf.mxu0  ;;  %v1139_v29 = vpop.f32.mrf.mxu1 }
 0x163   : > { %v1099_v28 = vadd.f32 %v1098_v26, %v387_v22  ;;  %v1140_v31 = vadd.f32 %v1139_v29, %v395_v24 }
 0x164   : > { %v1100_v32 = vpop.f32.mrf.mxu0  ;;  %v1141_v35 = vpop.f32.mrf.mxu1 }
 0x165   : > { %v1228_v33 = vmax.f32 %v1099_v28, 0.0  ;;  %v1101_v34 = vadd.f32 %v1100_v32, %v391_v25  ;;  %v1230_v36 = vmax.f32 %v1140_v31, 0.0  ;;  %v1142_v37 = vadd.f32 %v1141_v35, %v399_v27 }
 0x166   : > { %v1102_v38 = vpop.f32.mrf.mxu0  ;;  %v1143_v40 = vpop.f32.mrf.mxu1 }
 0x167   : > { %v1229_v39 = vmax.f32 %v1101_v34, 0.0  ;;  %v1231_v41 = vmax.f32 %v1142_v37, 0.0 }
 0x168   : > { %v1103_v42 = vpop.f32.mrf.mxu0  ;;  %v1144_v44 = vpop.f32.mrf.mxu1 }
 0x169   : > { %v1244_v43 = vcombine.low %v1228_v33, %v1229_v39  ;;  %v1245_v45 = vcombine.low %v1230_v36, %v1231_v41 }
 0x16b   : > { %v1252_v46 = vrot.slane %v1244_v43, %v1251_v61  ;;  %v1259_v47 = vrot.slane %v1245_v45, %v1251_v61 }
 0x16d   : > { %v1260_v48 = vcombine.low %v1252_v46, %v1259_v47 }
 0x16f   : > { %1280 = vst [vmem:[%s236_s10] sm:$0xff] %v1260_v48 }
 0x1a2   : > { %v1180_v49 = vpop.f32.mrf.mxu0  ;;  %v1221_v51 = vpop.f32.mrf.mxu1 }
 0x1a3   : > { %v1181_v50 = vadd.f32 %v1180_v49, %v403_v11  ;;  %v1222_v52 = vadd.f32 %v1221_v51, %v411_v14 }
 0x1a4   : > { %v1182_v54 = vpop.f32.mrf.mxu0  ;;  %v1223_v56 = vpop.f32.mrf.mxu1 }
 0x1a5   : > { %v1183_v55 = vadd.f32 %v1182_v54, %v407_v17  ;;  %v1224_v57 = vadd.f32 %v1223_v56, %v415_v18  ;;  %v1232_v59 = vmax.f32 %v1181_v50, 0.0  ;;  %v1234_v63 = vmax.f32 %v1222_v52, 0.0 }
 0x1a6   : > { %v1184_v58 = vpop.f32.mrf.mxu0  ;;  %v1225_v62 = vpop.f32.mrf.mxu1 }
 0x1a7   : > { %v1233_v60 = vmax.f32 %v1183_v55, 0.0  ;;  %v1235_v0 = vmax.f32 %v1224_v57, 0.0 }
 0x1a8   : > { %v1185_v1 = vpop.f32.mrf.mxu0  ;;  %v1226_v3 = vpop.f32.mrf.mxu1 }
 0x1a9   : > { %v1261_v2 = vcombine.low %v1232_v59, %v1233_v60  ;;  %v1262_v4 = vcombine.low %v1234_v63, %v1235_v0 }
 0x1ab   : > { %v1269_v5 = vrot.slane %v1261_v2, %v1251_v61  ;;  %v1276_v6 = vrot.slane %v1262_v4, %v1251_v61 }
 0x1ad   : > { %v1277_v7 = vcombine.low %v1269_v5, %v1276_v6 }
 0x1af   : > { %1281 = vst [vmem:[%s236_s10 + $0x8] sm:$0xff] %v1277_v7 }
 0x1b0   : > { %1712 = shalt.err (!%p1709_p1)
}
 0x1b1   : > { %s1713_s24 = scalar_lea.hbm %s1295_s9, 256  ;;  %s1717_s23 = scalar_lea.hbm %s2149_s3, 1024 }
 0x1b2   : > { %p1714_p6 = scmp.ne.s32.totalorder %s1295_s9, %s1713_s24  ;;  %p1718_p9 = scmp.lt.s32.totalorder %s1295_s9, %s2149_s3 }
 0x1b3   : > { %p1719_p3 = scmp.lt.s32.totalorder %s1717_s23, %s1713_s24 }
 0x1b4   : > { %p1715_p10 = pnand %p1714_p6, %p2163_p4 }
 0x1b5   : > { %p1720_p5 = por %p1719_p3, %p1718_p9 }
 0x1b6   : > { %p1716_p7 = pneg %p1715_p10 }
 0x1b8   : > { %p1721_p8 = pnand %p1720_p5, %p1716_p7 }
 0x1ba   : > { %1724 = shalt.err (!%p1721_p8)
}
 0x1bb   : > { %1559 = dma.vmem_to_hbm [thread:$0]  (%p2163_p4), %s1298_s5, 256, %s1295_s9, %s1283_s6  }
 0x1bc PF: > { %p1579_p12 = scmp.ge.s32.totalorder %s1767_s15, 2  ;;  %s1309_s27 = sand.u32 1, %s1755_s12  }
 0x1bd   : > { %p2164_p0 = scmp.ne.s32.totalorder %s2157_s28, 0  ;;  %s1310_s4 = scalar_lea.sflag [#allocation4], %s1309_s27 }
 0x1bf   : > { %p1573_p11 = pnand %p1579_p12, %p2164_p0 }
 0x1c1   : > { %p1574_p2 = pneg %p1573_p11 }
 0x1c3   : > { %1750 = dma.done.wait (%p1574_p2), %s1310_s4, 256  }
 0x1c4   : > { %1752 = vsyncadd (%p1574_p2), %s1310_s4, 4294967040  ;;  %p17_p13 = scmp.ge.s32.totalorder %s1818_s16, 6   ;;  %s2165_s12 = smov %s1759_s13 }
 0x1c5   : > { %s2166_s13 = smov %s1763_s14  ;;  %s2167_s14 = smov %s1828_s19 }
 0x1c6   : > { %s2168_s15 = smov %s1818_s16  ;;  %19 = sbr.rel (!%p17_p13) target bundleno = 6 (0x6), region = 93 }
 0x1cb   :  { %1315 = vsyncpa [#allocation3], 1 }
 0x1cc   :  { %1317 = vsyncpa [#allocation3 + $0x1], 1 }
 0x1cd   :  { %1318 = vsyncpa [#allocation6], 1 }
 0x1ce   :  { %1320 = vsyncpa [#allocation6 + $0x1], 1 }
 0x1cf   :  { %1321 = vsyncpa [#allocation4], 1 }
 0x1d0   :  { %1323 = vsyncpa [#allocation4 + $0x1], 1 }

</bundles_post_ra>
